<compile_context>
chip_gen: v6e
topology: v6e:2x2x1
jax: 0.10.0
libtpu: 0.0.40
codegen_flags: <defaults>
</compile_context>

<pallas_src>
import functools

import jax
import jax.numpy as jnp
from jax.experimental import pallas as pl
from jax.experimental.pallas import tpu as pltpu

EPS = 1e-5
LANE = 128


def classifier_kernel(x_ref, w1_ref, b1_ref, w2_ref, b2_ref, o_ref):
    # x arrives in f32 (4 B/elem HBM read); cast to bf16 on the VPU (huge slack) here
    # instead of paying a separate wrapper-side XLA cast pass (8 B/elem of HBM traffic).
    x = x_ref[...].astype(jnp.bfloat16)
    # fc1 with bn1 pre-folded into w1/b1            [MXU: bf16 operands, f32 accumulate]
    h = jnp.dot(x, w1_ref[...], preferred_element_type=jnp.float32)
    # bias + ReLU in f32                            [VPU]
    h = jnp.maximum(h + b1_ref[...], 0.0)
    # fc2 with bn2 pre-folded into w2/b2            [MXU]
    out = jnp.dot(h.astype(w2_ref.dtype), w2_ref[...],
                  preferred_element_type=jnp.float32) + b2_ref[...]
    o_ref[...] = out.astype(o_ref.dtype)


def _round_up(n, m):
    return ((n + m - 1) // m) * m


def fold_params(p):
    """Fold bn1->fc1 and bn2->fc2; zero-pad only the HIDDEN lane dim to 128.

    The output dim is deliberately left un-padded (outc << 128): the kernel is HBM-bound
    and a lane-dense f32 output block would multiply writeback bytes by ~16x.
    """
    inc, mid = p["w1"].shape
    outc = p["w2"].shape[1]
    mid_p = _round_up(mid, LANE)

    # bn1(x) @ w1 + fb1 == x @ (s1[:,None]*w1) + ((b1 - m1*s1) @ w1 + fb1)
    s1 = p["g1"] * jax.lax.rsqrt(p["v1"] + EPS)                     # (1, inc)
    w1f = p["w1"] * s1.reshape(inc, 1)                              # (inc, mid)
    b1f = (p["b1"] - p["m1"] * s1) @ p["w1"] + p["fb1"]             # (1, mid)

    s2 = p["g2"] * jax.lax.rsqrt(p["v2"] + EPS)                     # (1, mid)
    w2f = p["w2"] * s2.reshape(mid, 1)                              # (mid, outc)
    b2f = (p["b2"] - p["m2"] * s2) @ p["w2"] + p["fb2"]             # (1, outc)

    # Padded hidden cols: zero weight cols -> bias 0 -> ReLU(0)=0 -> hit zero rows of
    # w2p, so the valid outputs are identical to the un-padded computation.
    w1p = jnp.zeros((inc, mid_p), jnp.float32).at[:, :mid].set(w1f).astype(jnp.bfloat16)
    b1p = jnp.zeros((1, mid_p), jnp.float32).at[:, :mid].set(b1f)
    w2p = jnp.zeros((mid_p, outc), jnp.float32).at[:mid, :].set(w2f).astype(jnp.bfloat16)
    b2p = b2f.astype(jnp.float32)
    return w1p, b1p, w2p, b2p


def _batch_dim_semantics():
    """CORE_PARALLEL on 2-TensorCore chips (v7x) so batch tiles shard across TCs;
    plain "parallel" elsewhere (single-TC v5e/v6e)."""
    try:
        kind = jax.devices()[0].device_kind.lower().replace(" ", "")
    except Exception:
        kind = ""
    if "v7" in kind or "tpu7" in kind:
        return (pltpu.CORE_PARALLEL,)
    return ("parallel",)


@functools.partial(jax.jit, static_argnames=("tile_b",))
def classifier_forward(x, params, *, tile_b=2048):
    """x: (B, inc) float32. params: dict of module parameters. Returns (B, outc) f32."""
    B, inc = x.shape
    w1p, b1p, w2p, b2p = fold_params(params)
    mid_p, outc = w2p.shape

    # Big sublane-aligned batch tile (each grid step costs ~0.35 us of fixed overhead and
    # the kernel is HBM-bound).  No batch pre-pad: grid = cdiv(B, tb); the edge tile's
    # out-of-bounds rows read garbage and their output writes are masked by Pallas.
    tb = min(tile_b, B)
    if tb >= 8:
        tb = (tb // 8) * 8
    n_tiles = pl.cdiv(B, tb)

    resident = lambda i: (0, 0)    # folded weights/biases stay VMEM-resident across tiles
    cost = pl.CostEstimate(
        flops=2 * B * (inc * mid_p + mid_p * outc),
        transcendentals=0,
        bytes_accessed=(4 * B * (inc + outc)                 # streamed x read + out write
                        + 2 * inc * mid_p + 2 * mid_p * outc  # bf16 folded weights
                        + 4 * (mid_p + outc)),                # f32 folded biases
    )

    out = pl.pallas_call(
        classifier_kernel,
        out_shape=jax.ShapeDtypeStruct((B, outc), jnp.float32),
        grid=(n_tiles,),
        in_specs=[
            pl.BlockSpec((tb, inc), lambda i: (i, 0)),   # x: streamed f32, double-buffered
            pl.BlockSpec((inc, mid_p), resident),        # folded fc1 weight (bf16)
            pl.BlockSpec((1, mid_p), resident),          # folded fc1 bias   (f32)
            pl.BlockSpec((mid_p, outc), resident),       # folded fc2 weight (bf16)
            pl.BlockSpec((1, outc), resident),           # folded fc2 bias   (f32)
        ],
        out_specs=pl.BlockSpec((tb, outc), lambda i: (i, 0)),   # narrow true-outc writeback
        compiler_params=pltpu.CompilerParams(
            dimension_semantics=_batch_dim_semantics(),
        ),
        cost_estimate=cost,
    )(x, w1p, b1p, w2p, b2p)
    return out


def init_params(key, inc, outc):
    """Deterministic synthetic parameters matching the PyTorch module's shapes."""
    mid = inc // 2
    ks = jax.random.split(key, 12)
    p = {}
    # bn1
    p["g1"] = (1.0 + 0.1 * jax.random.normal(ks[0], (1, inc))).astype(jnp.float32)
    p["b1"] = (0.1 * jax.random.normal(ks[1], (1, inc))).astype(jnp.float32)
    p["m1"] = (0.05 * jax.random.normal(ks[2], (1, inc))).astype(jnp.float32)
    p["v1"] = (1.0 + 0.1 * jnp.abs(jax.random.normal(ks[3], (1, inc)))).astype(jnp.float32)
    # fc1: PyTorch weight is (mid, inc); we store its transpose (inc, mid).
    p["w1"] = (jax.random.normal(ks[4], (inc, mid)) / jnp.sqrt(inc)).astype(jnp.float32)
    p["fb1"] = (0.1 * jax.random.normal(ks[5], (1, mid))).astype(jnp.float32)
    # bn2
    p["g2"] = (1.0 + 0.1 * jax.random.normal(ks[6], (1, mid))).astype(jnp.float32)
    p["b2"] = (0.1 * jax.random.normal(ks[7], (1, mid))).astype(jnp.float32)
    p["m2"] = (0.05 * jax.random.normal(ks[8], (1, mid))).astype(jnp.float32)
    p["v2"] = (1.0 + 0.1 * jnp.abs(jax.random.normal(ks[9], (1, mid)))).astype(jnp.float32)
    # fc2: PyTorch weight is (outc, mid); we store (mid, outc).
    p["w2"] = (jax.random.normal(ks[10], (mid, outc)) / jnp.sqrt(mid)).astype(jnp.float32)
    p["fb2"] = (0.1 * jax.random.normal(ks[11], (1, outc))).astype(jnp.float32)
    return p


def reference_forward(x, p):
    """Exact f32 forward of the PyTorch module in eval mode (no folding, no bf16)."""
    h = (x - p["m1"]) * jax.lax.rsqrt(p["v1"] + EPS) * p["g1"] + p["b1"]
    h = jnp.maximum(h @ p["w1"] + p["fb1"], 0.0)
    h = (h - p["m2"]) * jax.lax.rsqrt(p["v2"] + EPS) * p["g2"] + p["b2"]
    return h @ p["w2"] + p["fb2"]


if __name__ == "__main__":
    key = jax.random.PRNGKey(0)
    k_x, k_p = jax.random.split(key)

    B, INC, OUTC = 8, 32, 8          # small shapes consistent with Classifier(inc=32, outc=8)
    x = jax.random.normal(k_x, (B, INC), dtype=jnp.float32)
    params = init_params(k_p, INC, OUTC)

    out = jax.block_until_ready(classifier_forward(x, params))
    ref = reference_forward(x, params)

    assert out.shape == (B, OUTC)
    # bf16 MXU operands (f32 accumulation) vs the exact f32 reference -> loose tolerance.
    err = float(jnp.max(jnp.abs(out - ref)))
    assert jnp.allclose(out, ref, atol=5e-2, rtol=5e-2), f"mismatch vs reference, max|err|={err}"

    print("KERNEL_OK")
</pallas_src>

<mosaic_0001>
module attributes {stable_mosaic.version = 11 : i64} {
  func.func @classifier_kernel(%arg0: i32, %arg1: memref<8x32xf32, #tpu.memory_space<vmem>>, %arg2: memref<32x128xbf16, #tpu.memory_space<vmem>>, %arg3: memref<1x128xf32, #tpu.memory_space<vmem>>, %arg4: memref<128x8xbf16, #tpu.memory_space<vmem>>, %arg5: memref<1x8xf32, #tpu.memory_space<vmem>>, %arg6: memref<8x8xf32, #tpu.memory_space<vmem>>) attributes {dimension_semantics = [#tpu.dimension_semantics<parallel>], iteration_bounds = array<i64: 1>, scalar_prefetch = 0 : i64, scratch_operands = 0 : i64, tpu.core_type = #tpu.core_type<tc>, window_params = [{transform_indices = @transform_0, window_bounds = array<i64: 8, 32>}, {pipeline_mode = #tpu.pipeline_mode<synchronous>, transform_indices = @transform_1, window_bounds = array<i64: 32, 128>}, {pipeline_mode = #tpu.pipeline_mode<synchronous>, transform_indices = @transform_2, window_bounds = array<i64: 1, 128>}, {pipeline_mode = #tpu.pipeline_mode<synchronous>, transform_indices = @transform_3, window_bounds = array<i64: 128, 8>}, {pipeline_mode = #tpu.pipeline_mode<synchronous>, transform_indices = @transform_4, window_bounds = array<i64: 1, 8>}, {transform_indices = @transform_5, window_bounds = array<i64: 8, 8>}]} {
    %c0 = arith.constant 0 : index
    %c0_0 = arith.constant 0 : index
    %0 = vector.load %arg1[%c0, %c0_0] : memref<8x32xf32, #tpu.memory_space<vmem>>, vector<8x32xf32>
    %1 = arith.truncf %0 : vector<8x32xf32> to vector<8x32xbf16>
    %c0_1 = arith.constant 0 : index
    %c0_2 = arith.constant 0 : index
    %2 = vector.load %arg2[%c0_1, %c0_2] : memref<32x128xbf16, #tpu.memory_space<vmem>>, vector<32x128xbf16>
    %cst = arith.constant dense<0.000000e+00> : vector<8x128xf32>
    %3 = tpu.matmul %1, %2, %cst {dimension_numbers = #tpu.dot_dimension_numbers<[1], [0], [0], [1], [0, 0, 1, 1], [], []>} : vector<8x32xbf16>, vector<32x128xbf16>, vector<8x128xf32> -> vector<8x128xf32>
    %c0_3 = arith.constant 0 : index
    %c0_4 = arith.constant 0 : index
    %4 = vector.load %arg3[%c0_3, %c0_4] : memref<1x128xf32, #tpu.memory_space<vmem>>, vector<1x128xf32>
    %5 = vector.broadcast %4 : vector<1x128xf32> to vector<8x128xf32>
    %6 = arith.addf %3, %5 : vector<8x128xf32>
    %cst_5 = arith.constant 0.000000e+00 : f32
    %7 = vector.broadcast %cst_5 : f32 to vector<8x128xf32>
    %8 = arith.maximumf %6, %7 : vector<8x128xf32>
    %9 = arith.truncf %8 : vector<8x128xf32> to vector<8x128xbf16>
    %c0_6 = arith.constant 0 : index
    %c0_7 = arith.constant 0 : index
    %10 = vector.load %arg4[%c0_6, %c0_7] : memref<128x8xbf16, #tpu.memory_space<vmem>>, vector<128x8xbf16>
    %cst_8 = arith.constant dense<0.000000e+00> : vector<8x8xf32>
    %11 = tpu.matmul %9, %10, %cst_8 {dimension_numbers = #tpu.dot_dimension_numbers<[1], [0], [0], [1], [0, 0, 1, 1], [], []>} : vector<8x128xbf16>, vector<128x8xbf16>, vector<8x8xf32> -> vector<8x8xf32>
    %c0_9 = arith.constant 0 : index
    %c0_10 = arith.constant 0 : index
    %12 = vector.load %arg5[%c0_9, %c0_10] : memref<1x8xf32, #tpu.memory_space<vmem>>, vector<1x8xf32>
    %13 = vector.broadcast %12 : vector<1x8xf32> to vector<8x8xf32>
    %14 = arith.addf %11, %13 : vector<8x8xf32>
    %c0_11 = arith.constant 0 : index
    %c0_12 = arith.constant 0 : index
    %15 = vector.load %arg6[%c0_11, %c0_12] : memref<8x8xf32, #tpu.memory_space<vmem>>, vector<8x8xf32>
    tpu.vector_store %arg6[%c0_11, %c0_12], %14 {strides = array<i32>} : memref<8x8xf32, #tpu.memory_space<vmem>>, vector<8x8xf32>,
    return
  }
  func.func @transform_0(%arg0: i32) -> (i32, i32) {
    %c0_i32 = arith.constant 0 : i32
    %c0_i32_0 = arith.constant 0 : i32
    return %arg0, %c0_i32 : i32, i32
  }
  func.func @transform_1(%arg0: i32) -> (i32, i32) {
    %c0_i32 = arith.constant 0 : i32
    %c0_i32_0 = arith.constant 0 : i32
    %c0_i32_1 = arith.constant 0 : i32
    return %c0_i32, %c0_i32_0 : i32, i32
  }
  func.func @transform_2(%arg0: i32) -> (i32, i32) {
    %c0_i32 = arith.constant 0 : i32
    %c0_i32_0 = arith.constant 0 : i32
    %c0_i32_1 = arith.constant 0 : i32
    return %c0_i32, %c0_i32_0 : i32, i32
  }
  func.func @transform_3(%arg0: i32) -> (i32, i32) {
    %c0_i32 = arith.constant 0 : i32
    %c0_i32_0 = arith.constant 0 : i32
    %c0_i32_1 = arith.constant 0 : i32
    return %c0_i32, %c0_i32_0 : i32, i32
  }
  func.func @transform_4(%arg0: i32) -> (i32, i32) {
    %c0_i32 = arith.constant 0 : i32
    %c0_i32_0 = arith.constant 0 : i32
    %c0_i32_1 = arith.constant 0 : i32
    return %c0_i32, %c0_i32_0 : i32, i32
  }
  func.func @transform_5(%arg0: i32) -> (i32, i32) {
    %c0_i32 = arith.constant 0 : i32
    %c0_i32_0 = arith.constant 0 : i32
    return %arg0, %c0_i32 : i32, i32
  }
}

</mosaic_0001>

<bundles_post_ra>
// kernel: classifier_forward.1
= control target key start
LH: loop header
LB: loop body
LE: loop exit
PB: predicated region body
PF: predicated region fallthrough
CT: control target
= control target key end

     0   :  { %v308_v1 = vmov 0.0   ;;  %vm309_vm0 = vmmov 0   ;;  %vm47_vm1 = vcmask 261120   ;;  %s383_s0 = inlined_call_operand.vmem [shape: f32[8,32], index: 0, kind: input, shape index: {}]   ;;  %s384_s1 = inlined_call_operand.vmem [shape: bf16[32,128], index: 1, kind: input, shape index: {}]   ;;  %s385_s2 = inlined_call_operand.vmem [shape: f32[1,128], index: 2, kind: input, shape index: {}]   ;;  %s386_s3 = inlined_call_operand.vmem [shape: bf16[128,8], index: 3, kind: input, shape index: {}]   ;;  %s387_s4 = inlined_call_operand.vmem [shape: f32[1,8], index: 4, kind: input, shape index: {}]   ;;  %s388_s5 = inlined_call_operand.hbm [shape: f32[8,8], index: 5, kind: output, shape index: {}]  }
   0x1   :  { %v276_v0 = vld [vmem:[%s384_s1 + $0x8] sm:$0xff]   ;;  %245 = vmatprep.subr.bf16.mxu0 %v308_v1  ;;  %v277_v2 = vld [vmem:[%s384_s1] sm:$0xff]   ;;  %253 = vmatprep.subr.bf16.mxu1 %v308_v1  ;;  %v278_v4 = vld [vmem:[%s386_s3 + $0x38] sm:$0xff]  }
   0x2   :  { %246 = vmatpush3.bf16.msra.mxu0 %v276_v0  ;;  %249 = vmatprep.mubr.msk.bf16.mxu0 %vm309_vm0, %v308_v1  ;;  %v22_v3 = vld [vmem:[%s383_s0] sm:$0xff]  ;;  %v279_v6 = vld [vmem:[%s386_s3 + $0x30] sm:$0xff]   ;;  %v280_v7 = vld [vmem:[%s386_s3 + $0x28] sm:$0xff]  }
   0x3   :  { %247 = vmatprep.subr.bf16.mxu0 %v308_v1  ;;  %269 = vmatprep.mubr.msk.bf16.mxu1 %vm309_vm0, %v308_v1  ;;  %v23_v5 = vpack.c.bf16 %v22_v3, %v22_v3 }
   0x4   :  { %254 = vmatpush3.bf16.msra.mxu1 %v278_v4 }
   0x5   :  { %255 = vmatprep.subr.bf16.mxu1 %v308_v1 }
   0x6   :  { %248 = vmatpush3.bf16.msra.mxu0 %v277_v2 }
   0x8   :  { %256 = vmatpush3.bf16.msra.mxu1 %v279_v6 }
   0x9   :  { %250 = vmatmul.mubr.msk.bf16.vlgmr.msra.gmra.mxu0 %vm47_vm1, %v23_v5  ;;  %257 = vmatprep.subr.bf16.mxu1 %v308_v1 }
   0xa   :  { %10 = vsyncpa [#allocation3], 0  ;;  %v281_v8 = vld [vmem:[%s386_s3 + $0x20] sm:$0xff]   ;;  %v282_v9 = vld [vmem:[%s386_s3 + $0x18] sm:$0xff]   ;;  %s310_s17 = smov [#allocation2]   ;;  %vm204_vm2 = vcmask 64512  }
   0xb   :  { %v283_v10 = vld [vmem:[%s386_s3 + $0x10] sm:$0xff]   ;;  %v284_v11 = vld [vmem:[%s386_s3 + $0x8] sm:$0xff]   ;;  %v285_v12 = vld [vmem:[%s386_s3] sm:$0xff]   ;;  %s212_s18 = sshll.u32 %s310_s17, 4  ;;  %s213_s18 = int_to_ptr.vmem [resolvable:$true] %s212_s18 }
   0xc   :  { %258 = vmatpush3.bf16.msra.mxu1 %v280_v7  ;;  %v220_v13 = vld [vmem:[%s385_s2] ss:$0 sm:$0xff]  ;;  %s286_s2 = scalar_lea.vmem %s213_s18, 128  ;;  %p291_p1 = scmp.lt.s32.totalorder %s213_s18, %s213_s18 }
   0xd   :  { %259 = vmatprep.subr.bf16.mxu1 %v308_v1  ;;  %v224_v21 = vld [vmem:[%s387_s4] ss:$0 sm:$0xff]  ;;  %p287_p0 = scmp.ne.s32.totalorder %s213_s18, %s286_s2  ;;  %p292_p2 = scmp.lt.s32.totalorder %s286_s2, %s286_s2 }
   0xf   :  { %p293_p3 = por %p292_p2, %p291_p1 }
  0x10   :  { %260 = vmatpush3.bf16.msra.mxu1 %v281_v8 }
  0x11   :  { %261 = vmatprep.subr.bf16.mxu1 %v308_v1  ;;  %p294_p4 = pnand %p293_p3, %p287_p0 }
  0x14   :  { %262 = vmatpush3.bf16.msra.mxu1 %v282_v9 }
  0x15   :  { %263 = vmatprep.subr.bf16.mxu1 %v308_v1 }
  0x18   :  { %264 = vmatpush3.bf16.msra.mxu1 %v283_v10 }
  0x19   :  { %265 = vmatprep.subr.bf16.mxu1 %v308_v1 }
  0x1c   :  { %266 = vmatpush3.bf16.msra.mxu1 %v284_v11 }
  0x1d   :  { %267 = vmatprep.subr.bf16.mxu1 %v308_v1 }
  0x20   :  { %268 = vmatpush3.bf16.msra.mxu1 %v285_v12 }
  0xc9   :  { %v85_v14 = vpop.f32.mrf.mxu0 }
  0xca   :  { %v86_v15 = vadd.f32 %v220_v13, %v85_v14 }
  0xcb   :  { %v251_v16 = vpop.f32.mrf.mxu0 }
  0xcc   :  { %v91_v17 = vmax.f32 %v86_v15, 0.0 }
  0xcd   :  { %v88_v18 = vpop.f32.mrf.mxu0 }
  0xce   :  { %v92_v19 = vpack.c.bf16 %v91_v17, %v91_v17 }
  0xcf   :  { %v252_v20 = vpop.f32.mrf.mxu0 }
  0xd0   :  { %270 = vmatmul.mubr.bf16.vlgmr.msra.gmra.mxu1 %v92_v19 }
 0x190   :  { %v198_v22 = vpop.f32.mrf.mxu1 }
 0x191   :  { %v199_v23 = vadd.f32 %v224_v21, %v198_v22 }
 0x192   :  { %v271_v24 = vpop.f32.mrf.mxu1 }
 0x193   :  { %205 = vst.msk [vmem:[#allocation2] sm:$0xff] %vm204_vm2, %v199_v23 }
 0x194   :  { %v201_v25 = vpop.f32.mrf.mxu1 }
 0x195   :  { %297 = shalt.err (!%p294_p4)
}
 0x196   :  { %215 = dma.vmem_to_hbm [thread:$0]  %s213_s18, 128, %s388_s5, [#allocation3]   ;;  %v272_v26 = vpop.f32.mrf.mxu1 }
 0x197   :  { %306 = dma.done.wait [#allocation3], 128  }
 0x198   :  { %307 = vsyncadd [#allocation3], 4294967168 }
 0x199   :  { %219 = vsyncpa [#allocation3], 1 }

</bundles_post_ra>
